<compile_context>
chip_gen: v5e
topology: v5e:2x2
jax: 0.10.0
libtpu: 0.0.40
codegen_flags: <defaults>
</compile_context>

<pallas_src>
import math

import jax
import jax.numpy as jnp
import numpy as np
from jax.experimental import pallas as pl
from jax.experimental.pallas import tpu as pltpu


def build_pe_table(d_model: int, max_seq_len: int = 80) -> jnp.ndarray:
    """Exactly mirrors the PyTorch __init__ double loop (vectorized).

    Note: keeps the tutorial's cos exponent 2*(i+1)/d_model (not the canonical
    2*i/d_model) for bug-for-bug compatibility with the reference module.
    """
    assert d_model % 2 == 0, "d_model must be even for the sin/cos interleave"
    pos = np.arange(max_seq_len, dtype=np.float32)[:, None]          # (L, 1)
    i_even = np.arange(0, d_model, 2, dtype=np.float32)[None, :]     # (1, D/2)
    pe = np.zeros((max_seq_len, d_model), dtype=np.float32)
    pe[:, 0::2] = np.sin(pos / np.power(10000.0, 2.0 * i_even / d_model))
    pe[:, 1::2] = np.cos(pos / np.power(10000.0, 2.0 * (i_even + 1.0) / d_model))
    return jnp.asarray(pe)                                            # (L, D)


def _pos_enc_kernel(x_ref, pe_ref, o_ref, *, scale: float):
    # x_ref: (tb, S*D) row tile.  pe_ref: (1, S*D), broadcast across rows in-register.
    o_ref[...] = x_ref[...] * scale + pe_ref[...]


def positional_encoder(x: jnp.ndarray, pe: jnp.ndarray, d_model: int) -> jnp.ndarray:
    """x: (B, S, D) float32.  pe: (max_seq_len, D).

    Returns x*sqrt(d_model) + pe[:x.shape[0]] broadcast over axis 1 (the module's
    quirk: pe is sliced by the *batch* size, so positional semantics require B == S).
    """
    B, S, D = x.shape
    assert D == d_model, "last dim of x must equal d_model"
    assert B == S, "module's pe[:, :x.shape[0]] broadcast requires batch == seq"
    assert B <= pe.shape[0], "x.shape[0] exceeds max_seq_len of the pe table"

    seq_len = B                       # module quirk: slices pe by x.shape[0]
    pe_slice = pe[:seq_len]           # (S, D)

    scale = float(math.sqrt(d_model))
    itemsize = jnp.dtype(x.dtype).itemsize

    # Lane-dense 2D view: last dim = S*D (256 at the example size, multiple of 128).
    SD = S * D
    x2 = x.reshape(B, SD)
    pe2 = pe_slice.reshape(1, SD)

    # Row-tile sizing: one block if the whole problem is small; otherwise ~2 MiB
    # sublane-aligned row tiles (keeps double-buffered VMEM use well under the
    # default scoped limit on v5e/v6e/v7x while staying near the HBM roofline).
    target_block_bytes = 2 * 1024 * 1024
    bytes_per_row = SD * itemsize
    tb = max(1, min(B, target_block_bytes // max(bytes_per_row, 1)))
    if tb < B:
        tb = max(8, (tb // 8) * 8)    # second-to-last block dim must be /8 if not full
    grid_b = pl.cdiv(B, tb)

    kernel = lambda x_ref, pe_ref, o_ref: _pos_enc_kernel(x_ref, pe_ref, o_ref, scale=scale)

    cost = pl.CostEstimate(
        flops=2 * B * SD,                              # one mul + one add per element
        transcendentals=0,
        bytes_accessed=(2 * B * SD + SD) * itemsize,   # read x + pe, write out
    )

    out2 = pl.pallas_call(
        kernel,
        out_shape=jax.ShapeDtypeStruct((B, SD), x.dtype),
        grid_spec=pltpu.PrefetchScalarGridSpec(
            num_scalar_prefetch=0,
            grid=(grid_b,),
            in_specs=[
                pl.BlockSpec((tb, SD), lambda i: (i, 0)),   # row tile of x
                pl.BlockSpec((1, SD), lambda i: (0, 0)),    # pe, same block every step
            ],
            out_specs=pl.BlockSpec((tb, SD), lambda i: (i, 0)),
        ),
        compiler_params=pltpu.CompilerParams(
            dimension_semantics=("parallel",)),             # lets v7x's 2 TCs split rows
        cost_estimate=cost,
    )(x2, pe2)

    return out2.reshape(B, S, D)


if __name__ == "__main__":
    d_model = 32
    max_seq_len = 80
    batch = 8   # == seq so the module's pe[:, :x.shape[0]] broadcast is well defined
    seq = 8

    key = jax.random.PRNGKey(0)
    x = jax.random.normal(key, (batch, seq, d_model), dtype=jnp.float32)

    pe = build_pe_table(d_model, max_seq_len)

    out = positional_encoder(x, pe, d_model)
    out = jax.block_until_ready(out)

    # Reference check in plain JAX (same math as the PyTorch forward).
    ref = x * math.sqrt(d_model) + pe[: x.shape[0]][None, :, :]
    np.testing.assert_allclose(np.asarray(out), np.asarray(ref), rtol=1e-6, atol=1e-6)

    print("KERNEL_OK")
</pallas_src>

<mosaic_0001>
module attributes {stable_mosaic.version = 11 : i64} {
  func.func @_lambda_(%arg0: i32, %arg1: memref<8x256xf32, #tpu.memory_space<vmem>>, %arg2: memref<1x256xf32, #tpu.memory_space<vmem>>, %arg3: memref<8x256xf32, #tpu.memory_space<vmem>>) attributes {dimension_semantics = [#tpu.dimension_semantics<parallel>], iteration_bounds = array<i64: 1>, scalar_prefetch = 0 : i64, scratch_operands = 0 : i64, tpu.core_type = #tpu.core_type<tc>, window_params = [{transform_indices = @transform_0, window_bounds = array<i64: 8, 256>}, {pipeline_mode = #tpu.pipeline_mode<synchronous>, transform_indices = @transform_1, window_bounds = array<i64: 1, 256>}, {transform_indices = @transform_2, window_bounds = array<i64: 8, 256>}]} {
    %c0 = arith.constant 0 : index
    %c0_0 = arith.constant 0 : index
    %0 = vector.load %arg1[%c0, %c0_0] : memref<8x256xf32, #tpu.memory_space<vmem>>, vector<8x256xf32>
    %cst = arith.constant 5.65685415 : f32
    %1 = vector.broadcast %cst : f32 to vector<8x256xf32>
    %2 = arith.mulf %0, %1 : vector<8x256xf32>
    %c0_1 = arith.constant 0 : index
    %c0_2 = arith.constant 0 : index
    %3 = vector.load %arg2[%c0_1, %c0_2] : memref<1x256xf32, #tpu.memory_space<vmem>>, vector<1x256xf32>
    %4 = vector.broadcast %3 : vector<1x256xf32> to vector<8x256xf32>
    %5 = arith.addf %2, %4 : vector<8x256xf32>
    %c0_3 = arith.constant 0 : index
    %c0_4 = arith.constant 0 : index
    %6 = vector.load %arg3[%c0_3, %c0_4] : memref<8x256xf32, #tpu.memory_space<vmem>>, vector<8x256xf32>
    tpu.vector_store %arg3[%c0_3, %c0_4], %5 {strides = array<i32>} : memref<8x256xf32, #tpu.memory_space<vmem>>, vector<8x256xf32>,
    return
  }
  func.func @transform_0(%arg0: i32) -> (i32, i32) {
    %c0_i32 = arith.constant 0 : i32
    %c0_i32_0 = arith.constant 0 : i32
    return %arg0, %c0_i32 : i32, i32
  }
  func.func @transform_1(%arg0: i32) -> (i32, i32) {
    %c0_i32 = arith.constant 0 : i32
    %c0_i32_0 = arith.constant 0 : i32
    %c0_i32_1 = arith.constant 0 : i32
    return %c0_i32, %c0_i32_0 : i32, i32
  }
  func.func @transform_2(%arg0: i32) -> (i32, i32) {
    %c0_i32 = arith.constant 0 : i32
    %c0_i32_0 = arith.constant 0 : i32
    return %arg0, %c0_i32 : i32, i32
  }
}

</mosaic_0001>

<bundles_post_ra>
// kernel: tpu_custom_call.1
= control target key start
LH: loop header
LB: loop body
LE: loop exit
PB: predicated region body
PF: predicated region fallthrough
CT: control target
= control target key end

     0   :  { %7 = vsyncpa [#allocation3], 0  ;;  %s180_s0 = inlined_call_operand.hbm [shape: f32[8,256], index: 0, kind: input, shape index: {}]   ;;  %s181_s1 = inlined_call_operand.hbm [shape: f32[1,256], index: 1, kind: input, shape index: {}]   ;;  %s182_s2 = inlined_call_operand.hbm [shape: f32[8,256], index: 2, kind: output, shape index: {}]  }
   0x1   :  { %8 = vsyncpa [#allocation6], 0 }
   0x2   :  { %9 = vsyncpa [#allocation4], 0  ;;  %s15_s11 = sshll.u32 %s180_s0, 4  ;;  %s153_s12 = smov [#allocation2]   ;;  %s16_s11 = int_to_ptr.hbm [resolvable:$true] %s15_s11 }
   0x3   :  { %s17_s13 = sshll.u32 %s153_s12, 4  ;;  %s26_s16 = sshll.u32 %s181_s1, 4  ;;  %s18_s13 = int_to_ptr.vmem [resolvable:$true] %s17_s13  ;;  %s27_s16 = int_to_ptr.hbm [resolvable:$true] %s26_s16 }
   0x4   :  { %20 = dma.hbm_to_vmem [thread:$0]  %s16_s11, 256, %s18_s13, [#allocation3]  }
   0x5   :  { %s154_s17 = smov [#allocation5]  }
   0x6   :  { %s28_s18 = sshll.u32 %s154_s17, 4  ;;  %s29_s18 = int_to_ptr.vmem [resolvable:$true] %s28_s18 }
   0x7   :  { %31 = dma.hbm_to_vmem [thread:$0]  %s27_s16, 32, %s29_s18, [#allocation6]  }
   0x8   :  { %147 = dma.done.wait [#allocation3], 256  }
   0x9   :  { %148 = vsyncadd [#allocation3], 4294967040 }
   0xa   :  { %149 = dma.done.wait [#allocation6], 32  }
   0xb   :  { %150 = vsyncadd [#allocation6], 4294967264  ;;  %v40_v0 = vld [vmem:[#allocation2] sm:$0xff]  ;;  %v44_v1 = vld [vmem:[#allocation5] sm:$0x3]  ;;  %s155_s0 = smov [#allocation7]  }
   0xc   :  { %v41_v2 = vld [vmem:[#allocation2 + $0x8] sm:$0xff]  ;;  %s59_s19 = sshll.u32 %s155_s0, 4  ;;  %s61_s22 = sshll.u32 %s182_s2, 4  ;;  %v42_v3 = vmul.f32 5.656854, %v40_v0  ;;  %v46_v4 = vperm.slane %v44_v1, 0  ;;  %s60_s19 = int_to_ptr.vmem [resolvable:$true] %s59_s19  ;;  %s62_s22 = int_to_ptr.hbm [resolvable:$true] %s61_s22 }
   0xd   :  { %v43_v5 = vmul.f32 5.656854, %v41_v2  ;;  %v47_v6 = vperm.slane %v44_v1, 1 }
   0xe   :  { %v50_v7 = vadd.f32 %v46_v4, %v42_v3 }
   0xf   :  { %v51_v8 = vadd.f32 %v47_v6, %v43_v5 }
  0x10   :  { %52 = vst [vmem:[#allocation7] sm:$0xff] %v50_v7 }
  0x11   :  { %53 = vst [vmem:[#allocation7 + $0x8] sm:$0xff] %v51_v8 }
  0x12   :  { %64 = dma.vmem_to_hbm [thread:$0]  %s60_s19, 256, %s62_s22, [#allocation4]  }
  0x13   :  { %151 = dma.done.wait [#allocation4], 256  }
  0x14   :  { %152 = vsyncadd [#allocation4], 4294967040 }
  0x15   :  { %69 = vsyncpa [#allocation3], 1 }
  0x16   :  { %70 = vsyncpa [#allocation6], 1 }
  0x17   :  { %71 = vsyncpa [#allocation4], 1 }

</bundles_post_ra>
